<compile_context>
chip_gen: v6e
topology: v6e:2x2x1
jax: 0.10.0
libtpu: 0.0.40
codegen_flags: <defaults>
</compile_context>

<pallas_src>
import functools

import jax
import jax.numpy as jnp
from jax import lax
from jax.experimental import pallas as pl
from jax.experimental.pallas import tpu as pltpu


def _round_up(v, m):
    return (v + m - 1) // m * m


def _vmem_capacity_bytes():
    try:
        cap = getattr(pltpu.get_tpu_info(), "vmem_capacity_bytes", None)
        if cap:
            return int(cap)
    except Exception:
        pass
    return 64 << 20  # conservative default (v7x per-TensorCore)


# ---------------------------------------------------------------------------
# Shared conv + bias + LeakyReLU body: 16 accumulated MXU matmuls over phases
# ---------------------------------------------------------------------------
def _conv_leaky(xps_ref, w_ref, b_ref, mask_ref, *, Wo, Lm):
    """xps_ref: (4, fi_pad, Lp)  w_ref: (16, fo_pad, fi_pad)  b_ref: (fo_pad,1) f32
    mask_ref: (1, Lm) f32. Returns f32 (fo_pad, Lm) activations (pad column zeroed)."""
    Wp = Wo + 1
    acc = None
    for kh in range(4):
        a, r = divmod(kh, 2)
        for kw in range(4):
            bb, s = divmod(kw, 2)
            p = 2 * r + s
            off = a * Wp + bb                         # static lane offset
            patch = xps_ref[p, :, off:off + Lm]       # (fi_pad, Lm), contiguous slice
            term = jnp.dot(w_ref[4 * kh + kw], patch,
                           preferred_element_type=jnp.float32)
            acc = term if acc is None else acc + term
    acc = acc + b_ref[...]
    y = jnp.where(acc > 0, acc, 0.2 * acc)            # LeakyReLU(0.2)
    return y * mask_ref[...]                          # zero the per-row pad column


# ---------------------------------------------------------------------------
# Fused path: conv + bias + act + BN stats + normalize, y resident in VMEM
# ---------------------------------------------------------------------------
def _fused_kernel(xps_ref, w_ref, b_ref, gamma_ref, beta_ref, mask_ref,
                  o_ref, ssum_sc, ssq_sc, *, Wo, Lm, inv_count, eps):
    n = pl.program_id(0)

    @pl.when(n == 0)
    def _():
        ssum_sc[...] = jnp.zeros_like(ssum_sc)
        ssq_sc[...] = jnp.zeros_like(ssq_sc)

    y = _conv_leaky(xps_ref, w_ref, b_ref, mask_ref, Wo=Wo, Lm=Lm)
    o_ref[n] = y                                       # resident (N, fo_pad, Lm) block
    ssum_sc[...] += jnp.sum(y, axis=1, keepdims=True)
    ssq_sc[...] += jnp.sum(y * y, axis=1, keepdims=True)

    @pl.when(n == pl.num_programs(0) - 1)
    def _():
        mean = ssum_sc[...] * inv_count
        var = jnp.maximum(ssq_sc[...] * inv_count - mean * mean, 0.0)
        scale = gamma_ref[...] * lax.rsqrt(var + eps)
        shift = beta_ref[...] - mean * scale

        def _norm(i, carry):
            o_ref[i] = o_ref[i] * scale + shift        # normalize resident y in place
            return carry

        lax.fori_loop(0, pl.num_programs(0), _norm, 0)


# ---------------------------------------------------------------------------
# Tiled fallback pass 1: conv + bias + act, per-image partial stats ("parallel" grid)
# ---------------------------------------------------------------------------
def _conv_act_stats_kernel(xps_ref, w_ref, b_ref, mask_ref,
                           y_ref, ssum_ref, ssq_ref, *, Wo, Lm):
    y = _conv_leaky(xps_ref, w_ref, b_ref, mask_ref, Wo=Wo, Lm=Lm)
    y_ref[...] = y.astype(y_ref.dtype)
    ssum_ref[...] = jnp.sum(y, axis=1, keepdims=True)
    ssq_ref[...] = jnp.sum(y * y, axis=1, keepdims=True)


# ---------------------------------------------------------------------------
# Tiled fallback pass 2: y * scale + shift
# ---------------------------------------------------------------------------
def _bn_kernel(y_ref, scale_ref, shift_ref, o_ref):
    y = y_ref[...].astype(jnp.float32)
    o_ref[...] = y * scale_ref[...] + shift_ref[...]


def down_conv_block(x, w, b, gamma, beta, *, eps=1e-5,
                    compute_dtype=jnp.bfloat16, force_tiled=False):
    """Forward pass of DownConvBlock. x: [N, fi, H, W] NCHW. Returns [N, fo, Ho, Wo]."""
    N, fi, H, W = x.shape
    fo = w.shape[0]
    assert H % 2 == 0 and W % 2 == 0, "DownConvBlock expects even H, W"
    Ho, Wo = H // 2, W // 2
    Wp = Wo + 1                      # padded output row pitch (keeps phase slices affine)
    Lm = Ho * Wp                     # per-image flattened output length
    Lp = (Ho + 2) * Wp               # per-image flattened phase length
    fi_pad = _round_up(fi, 8)
    fo_pad = _round_up(fo, 8)
    count = N * Ho * Wo
    isz = jnp.dtype(compute_dtype).itemsize

    # ---- input rearrangement: pad + phase split (no im2col in HBM, ~1x of x) ----
    xc = x.astype(compute_dtype)
    xp = jnp.pad(xc, ((0, 0), (0, fi_pad - fi), (1, 3), (1, 1)))
    xps = xp.reshape(N, fi_pad, Ho + 2, 2, Wp, 2)
    xps = jnp.transpose(xps, (0, 3, 5, 1, 2, 4)).reshape(N, 4, fi_pad, Lp)

    # ---- weights OIHW -> [16, fo_pad, fi_pad], (kh,kw)-major ----
    wp = jnp.pad(w.astype(compute_dtype),
                 ((0, fo_pad - fo), (0, fi_pad - fi), (0, 0), (0, 0)))
    w_mat = jnp.transpose(wp, (2, 3, 0, 1)).reshape(16, fo_pad, fi_pad)

    b_col = jnp.pad(b, (0, fo_pad - fo)).reshape(fo_pad, 1).astype(jnp.float32)
    gamma_col = jnp.pad(gamma, (0, fo_pad - fo)).reshape(fo_pad, 1).astype(jnp.float32)
    beta_col = jnp.pad(beta, (0, fo_pad - fo)).reshape(fo_pad, 1).astype(jnp.float32)
    mask = (jnp.arange(Lm, dtype=jnp.int32) % Wp < Wo).astype(jnp.float32).reshape(1, Lm)

    # ---- generation-aware VMEM budget ----
    cap = _vmem_capacity_bytes()
    vmem_limit = max(32 << 20, min(int(0.8 * cap), 100 << 20))
    out_bytes = N * fo_pad * Lm * 4
    fused_need = (2 * out_bytes                     # resident output (conservatively x2)
                  + 2 * 4 * fi_pad * Lp * isz       # double-buffered per-image phases
                  + 2 * 16 * fo_pad * fi_pad * isz  # weights
                  + 4 * fo_pad * Lm * 4             # in-kernel f32 temporaries
                  + 4 * (Lm + 4 * fo_pad))
    use_fused = (not force_tiled) and fused_need <= int(0.4 * cap)

    xps_spec = pl.BlockSpec((None, 4, fi_pad, Lp), lambda n: (n, 0, 0, 0))
    w_spec = pl.BlockSpec((16, fo_pad, fi_pad), lambda n: (0, 0, 0))
    col_spec = pl.BlockSpec((fo_pad, 1), lambda n: (0, 0))
    mask_spec = pl.BlockSpec((1, Lm), lambda n: (0, 0))

    if use_fused:
        kernel = functools.partial(_fused_kernel, Wo=Wo, Lm=Lm,
                                   inv_count=1.0 / count, eps=eps)
        out_flat = pl.pallas_call(
            kernel,
            out_shape=jax.ShapeDtypeStruct((N, fo_pad, Lm), jnp.float32),
            grid_spec=pltpu.PrefetchScalarGridSpec(
                num_scalar_prefetch=0,
                grid=(N,),
                in_specs=[xps_spec, w_spec, col_spec, col_spec, col_spec, mask_spec],
                out_specs=pl.BlockSpec((N, fo_pad, Lm), lambda n: (0, 0, 0)),
                scratch_shapes=[pltpu.VMEM((fo_pad, 1), jnp.float32),
                                pltpu.VMEM((fo_pad, 1), jnp.float32)]),
            compiler_params=pltpu.CompilerParams(
                dimension_semantics=("arbitrary",),
                vmem_limit_bytes=vmem_limit),
        )(xps, w_mat, b_col, gamma_col, beta_col, mask)
    else:
        # Pass 1: conv + act, per-image partial stats, "parallel" grid (v7x megacore OK).
        kernel1 = functools.partial(_conv_act_stats_kernel, Wo=Wo, Lm=Lm)
        y_flat, ssum_p, ssq_p = pl.pallas_call(
            kernel1,
            out_shape=(jax.ShapeDtypeStruct((N, fo_pad, Lm), compute_dtype),
                       jax.ShapeDtypeStruct((N, fo_pad, 1), jnp.float32),
                       jax.ShapeDtypeStruct((N, fo_pad, 1), jnp.float32)),
            grid_spec=pltpu.PrefetchScalarGridSpec(
                num_scalar_prefetch=0,
                grid=(N,),
                in_specs=[xps_spec, w_spec, col_spec, mask_spec],
                out_specs=(pl.BlockSpec((None, fo_pad, Lm), lambda n: (n, 0, 0)),
                           pl.BlockSpec((None, fo_pad, 1), lambda n: (n, 0, 0)),
                           pl.BlockSpec((None, fo_pad, 1), lambda n: (n, 0, 0)))),
            compiler_params=pltpu.CompilerParams(
                dimension_semantics=("parallel",),
                vmem_limit_bytes=vmem_limit),
        )(xps, w_mat, b_col, mask)

        # Tiny scalar glue: reduce partial sums, biased var, precompute scale/shift.
        ssum = jnp.sum(ssum_p, axis=0)
        ssq = jnp.sum(ssq_p, axis=0)
        mean = ssum / count
        var = jnp.maximum(ssq / count - mean * mean, 0.0)
        scale = gamma_col * lax.rsqrt(var + eps)
        shift = beta_col - mean * scale

        # Pass 2: lane-dense normalize + affine.
        out_flat = pl.pallas_call(
            _bn_kernel,
            out_shape=jax.ShapeDtypeStruct((N, fo_pad, Lm), jnp.float32),
            grid_spec=pltpu.PrefetchScalarGridSpec(
                num_scalar_prefetch=0,
                grid=(N,),
                in_specs=[pl.BlockSpec((None, fo_pad, Lm), lambda n: (n, 0, 0)),
                          col_spec, col_spec],
                out_specs=pl.BlockSpec((None, fo_pad, Lm), lambda n: (n, 0, 0))),
            compiler_params=pltpu.CompilerParams(
                dimension_semantics=("parallel",),
                vmem_limit_bytes=vmem_limit),
        )(y_flat, scale, shift)

    # Strip channel padding and the per-row pad column; reshape is metadata-only.
    out = out_flat.reshape(N, fo_pad, Ho, Wp)[:, :fo, :, :Wo]
    return out


def _reference(x, w, b, gamma, beta, eps=1e-5):
    """Pure-JAX reference matching the PyTorch module (training-mode BN)."""
    y = lax.conv_general_dilated(
        x.astype(jnp.float32), w.astype(jnp.float32),
        window_strides=(2, 2), padding=((1, 1), (1, 1)),
        dimension_numbers=("NCHW", "OIHW", "NCHW"))
    y = y + b.reshape(1, -1, 1, 1)
    y = jnp.where(y > 0, y, 0.2 * y)
    mean = jnp.mean(y, axis=(0, 2, 3), keepdims=True)
    var = jnp.mean((y - mean) ** 2, axis=(0, 2, 3), keepdims=True)  # biased var
    y = (y - mean) / jnp.sqrt(var + eps)
    return y * gamma.reshape(1, -1, 1, 1) + beta.reshape(1, -1, 1, 1)


if __name__ == "__main__":
    key = jax.random.PRNGKey(0)
    ks = jax.random.split(key, 20)

    cases = [
        # (N, fi, H,  W,  fo, compute_dtype, force_tiled, tol)
        (2, 4, 16, 16, 8,  jnp.float32,  False, 1e-3),   # fused, f32 (tight check)
        (2, 3, 16, 16, 6,  jnp.bfloat16, False, 5e-2),   # fused, bf16 + fi/fo padding
        (2, 4, 32, 32, 16, jnp.float32,  True,  1e-3),   # tiled 2-pass, f32
        (2, 4, 32, 32, 16, jnp.bfloat16, True,  5e-2),   # tiled 2-pass, bf16 y
    ]

    for idx, (N, fi, H, W, fo, cdt, tiled, tol) in enumerate(cases):
        k0, k1, k2, k3, k4 = ks[5 * idx:5 * idx + 5]
        x = jax.random.normal(k0, (N, fi, H, W), dtype=jnp.float32)
        w = jax.random.normal(k1, (fo, fi, 4, 4), dtype=jnp.float32) * 0.1
        b = jax.random.normal(k2, (fo,), dtype=jnp.float32) * 0.1
        gamma = 1.0 + 0.1 * jax.random.normal(k3, (fo,), dtype=jnp.float32)
        beta = 0.1 * jax.random.normal(k4, (fo,), dtype=jnp.float32)

        fwd = jax.jit(functools.partial(down_conv_block,
                                        compute_dtype=cdt, force_tiled=tiled))
        out = jax.block_until_ready(fwd(x, w, b, gamma, beta))
        ref = _reference(x, w, b, gamma, beta)
        assert out.shape == (N, fo, H // 2, W // 2), (idx, out.shape)
        err = float(jnp.max(jnp.abs(out - ref)))
        assert err <= tol, (idx, err)

    print("KERNEL_OK")
</pallas_src>

<mosaic_0001>
module attributes {stable_mosaic.version = 11 : i64} {
  func.func @_fused_kernel(%arg0: i32, %arg1: memref<1x4x8x90xf32, #tpu.memory_space<vmem>>, %arg2: memref<16x8x8xf32, #tpu.memory_space<vmem>>, %arg3: memref<8x1xf32, #tpu.memory_space<vmem>>, %arg4: memref<8x1xf32, #tpu.memory_space<vmem>>, %arg5: memref<8x1xf32, #tpu.memory_space<vmem>>, %arg6: memref<1x72xf32, #tpu.memory_space<vmem>>, %arg7: memref<2x8x72xf32, #tpu.memory_space<vmem>>, %arg8: memref<8x1xf32, #tpu.memory_space<vmem>>, %arg9: memref<8x1xf32, #tpu.memory_space<vmem>>) attributes {dimension_semantics = [#tpu.dimension_semantics<arbitrary>], iteration_bounds = array<i64: 2>, scalar_prefetch = 0 : i64, scratch_operands = 2 : i64, tpu.core_type = #tpu.core_type<tc>, window_params = [{transform_indices = @transform_0, window_bounds = array<i64: 1, 4, 8, 90>}, {pipeline_mode = #tpu.pipeline_mode<synchronous>, transform_indices = @transform_1, window_bounds = array<i64: 16, 8, 8>}, {pipeline_mode = #tpu.pipeline_mode<synchronous>, transform_indices = @transform_2, window_bounds = array<i64: 8, 1>}, {pipeline_mode = #tpu.pipeline_mode<synchronous>, transform_indices = @transform_3, window_bounds = array<i64: 8, 1>}, {pipeline_mode = #tpu.pipeline_mode<synchronous>, transform_indices = @transform_4, window_bounds = array<i64: 8, 1>}, {pipeline_mode = #tpu.pipeline_mode<synchronous>, transform_indices = @transform_5, window_bounds = array<i64: 1, 72>}, {pipeline_mode = #tpu.pipeline_mode<synchronous>, transform_indices = @transform_6, window_bounds = array<i64: 2, 8, 72>}]} {
    %c0_i32 = arith.constant 0 : i32
    %0 = arith.cmpi eq, %arg0, %c0_i32 : i32
    %1 = arith.extui %0 : i1 to i32
    %c0_i32_0 = arith.constant 0 : i32
    %2 = arith.cmpi ne, %1, %c0_i32_0 : i32
    scf.if %2 {
      %cst_131 = arith.constant 0.000000e+00 : f32
      %127 = vector.broadcast %cst_131 : f32 to vector<8x1xf32>
      %c0_132 = arith.constant 0 : index
      %c0_133 = arith.constant 0 : index
      %128 = vector.load %arg8[%c0_132, %c0_133] : memref<8x1xf32, #tpu.memory_space<vmem>>, vector<8x1xf32>
      tpu.vector_store %arg8[%c0_132, %c0_133], %127 {strides = array<i32>} : memref<8x1xf32, #tpu.memory_space<vmem>>, vector<8x1xf32>,
      %cst_134 = arith.constant 0.000000e+00 : f32
      %129 = vector.broadcast %cst_134 : f32 to vector<8x1xf32>
      %c0_135 = arith.constant 0 : index
      %c0_136 = arith.constant 0 : index
      %130 = vector.load %arg9[%c0_135, %c0_136] : memref<8x1xf32, #tpu.memory_space<vmem>>, vector<8x1xf32>
      tpu.vector_store %arg9[%c0_135, %c0_136], %129 {strides = array<i32>} : memref<8x1xf32, #tpu.memory_space<vmem>>, vector<8x1xf32>,
    } else {
    }
    %c0 = arith.constant 0 : index
    %c0_1 = arith.constant 0 : index
    %c0_2 = arith.constant 0 : index
    %c0_3 = arith.constant 0 : index
    %3 = vector.load %arg1[%c0, %c0_1, %c0_2, %c0_3] : memref<1x4x8x90xf32, #tpu.memory_space<vmem>>, vector<1x1x8x72xf32>
    %4 = vector.shape_cast %3 : vector<1x1x8x72xf32> to vector<8x72xf32>
    %c0_4 = arith.constant 0 : index
    %c0_5 = arith.constant 0 : index
    %c0_6 = arith.constant 0 : index
    %5 = vector.load %arg2[%c0_4, %c0_5, %c0_6] : memref<16x8x8xf32, #tpu.memory_space<vmem>>, vector<1x8x8xf32>
    %6 = vector.shape_cast %5 : vector<1x8x8xf32> to vector<8x8xf32>
    %cst = arith.constant dense<0.000000e+00> : vector<8x72xf32>
    %7 = tpu.matmul %6, %4, %cst {dimension_numbers = #tpu.dot_dimension_numbers<[1], [0], [0], [1], [0, 0, 1, 1], [], []>} : vector<8x8xf32>, vector<8x72xf32>, vector<8x72xf32> -> vector<8x72xf32>
    %c0_7 = arith.constant 0 : index
    %c1 = arith.constant 1 : index
    %c0_8 = arith.constant 0 : index
    %c0_9 = arith.constant 0 : index
    %8 = vector.load %arg1[%c0_7, %c1, %c0_8, %c0_9] : memref<1x4x8x90xf32, #tpu.memory_space<vmem>>, vector<1x1x8x72xf32>
    %9 = vector.shape_cast %8 : vector<1x1x8x72xf32> to vector<8x72xf32>
    %c1_10 = arith.constant 1 : index
    %c0_11 = arith.constant 0 : index
    %c0_12 = arith.constant 0 : index
    %10 = vector.load %arg2[%c1_10, %c0_11, %c0_12] : memref<16x8x8xf32, #tpu.memory_space<vmem>>, vector<1x8x8xf32>
    %11 = vector.shape_cast %10 : vector<1x8x8xf32> to vector<8x8xf32>
    %cst_13 = arith.constant dense<0.000000e+00> : vector<8x72xf32>
    %12 = tpu.matmul %11, %9, %cst_13 {dimension_numbers = #tpu.dot_dimension_numbers<[1], [0], [0], [1], [0, 0, 1, 1], [], []>} : vector<8x8xf32>, vector<8x72xf32>, vector<8x72xf32> -> vector<8x72xf32>
    %13 = arith.addf %7, %12 : vector<8x72xf32>
    %c0_14 = arith.constant 0 : index
    %c0_15 = arith.constant 0 : index
    %c0_16 = arith.constant 0 : index
    %c1_17 = arith.constant 1 : index
    %14 = vector.load %arg1[%c0_14, %c0_15, %c0_16, %c1_17] : memref<1x4x8x90xf32, #tpu.memory_space<vmem>>, vector<1x1x8x72xf32>
    %15 = vector.shape_cast %14 : vector<1x1x8x72xf32> to vector<8x72xf32>
    %c2 = arith.constant 2 : index
    %c0_18 = arith.constant 0 : index
    %c0_19 = arith.constant 0 : index
    %16 = vector.load %arg2[%c2, %c0_18, %c0_19] : memref<16x8x8xf32, #tpu.memory_space<vmem>>, vector<1x8x8xf32>
    %17 = vector.shape_cast %16 : vector<1x8x8xf32> to vector<8x8xf32>
    %cst_20 = arith.constant dense<0.000000e+00> : vector<8x72xf32>
    %18 = tpu.matmul %17, %15, %cst_20 {dimension_numbers = #tpu.dot_dimension_numbers<[1], [0], [0], [1], [0, 0, 1, 1], [], []>} : vector<8x8xf32>, vector<8x72xf32>, vector<8x72xf32> -> vector<8x72xf32>
    %19 = arith.addf %13, %18 : vector<8x72xf32>
    %c0_21 = arith.constant 0 : index
    %c1_22 = arith.constant 1 : index
    %c0_23 = arith.constant 0 : index
    %c1_24 = arith.constant 1 : index
    %20 = vector.load %arg1[%c0_21, %c1_22, %c0_23, %c1_24] : memref<1x4x8x90xf32, #tpu.memory_space<vmem>>, vector<1x1x8x72xf32>
    %21 = vector.shape_cast %20 : vector<1x1x8x72xf32> to vector<8x72xf32>
    %c3 = arith.constant 3 : index
    %c0_25 = arith.constant 0 : index
    %c0_26 = arith.constant 0 : index
    %22 = vector.load %arg2[%c3, %c0_25, %c0_26] : memref<16x8x8xf32, #tpu.memory_space<vmem>>, vector<1x8x8xf32>
    %23 = vector.shape_cast %22 : vector<1x8x8xf32> to vector<8x8xf32>
    %cst_27 = arith.constant dense<0.000000e+00> : vector<8x72xf32>
    %24 = tpu.matmul %23, %21, %cst_27 {dimension_numbers = #tpu.dot_dimension_numbers<[1], [0], [0], [1], [0, 0, 1, 1], [], []>} : vector<8x8xf32>, vector<8x72xf32>, vector<8x72xf32> -> vector<8x72xf32>
    %25 = arith.addf %19, %24 : vector<8x72xf32>
    %c0_28 = arith.constant 0 : index
    %c2_29 = arith.constant 2 : index
    %c0_30 = arith.constant 0 : index
    %c0_31 = arith.constant 0 : index
    %26 = vector.load %arg1[%c0_28, %c2_29, %c0_30, %c0_31] : memref<1x4x8x90xf32, #tpu.memory_space<vmem>>, vector<1x1x8x72xf32>
    %27 = vector.shape_cast %26 : vector<1x1x8x72xf32> to vector<8x72xf32>
    %c4 = arith.constant 4 : index
    %c0_32 = arith.constant 0 : index
    %c0_33 = arith.constant 0 : index
    %28 = vector.load %arg2[%c4, %c0_32, %c0_33] : memref<16x8x8xf32, #tpu.memory_space<vmem>>, vector<1x8x8xf32>
    %29 = vector.shape_cast %28 : vector<1x8x8xf32> to vector<8x8xf32>
    %cst_34 = arith.constant dense<0.000000e+00> : vector<8x72xf32>
    %30 = tpu.matmul %29, %27, %cst_34 {dimension_numbers = #tpu.dot_dimension_numbers<[1], [0], [0], [1], [0, 0, 1, 1], [], []>} : vector<8x8xf32>, vector<8x72xf32>, vector<8x72xf32> -> vector<8x72xf32>
    %31 = arith.addf %25, %30 : vector<8x72xf32>
    %c0_35 = arith.constant 0 : index
    %c3_36 = arith.constant 3 : index
    %c0_37 = arith.constant 0 : index
    %c0_38 = arith.constant 0 : index
    %32 = vector.load %arg1[%c0_35, %c3_36, %c0_37, %c0_38] : memref<1x4x8x90xf32, #tpu.memory_space<vmem>>, vector<1x1x8x72xf32>
    %33 = vector.shape_cast %32 : vector<1x1x8x72xf32> to vector<8x72xf32>
    %c5 = arith.constant 5 : index
    %c0_39 = arith.constant 0 : index
    %c0_40 = arith.constant 0 : index
    %34 = vector.load %arg2[%c5, %c0_39, %c0_40] : memref<16x8x8xf32, #tpu.memory_space<vmem>>, vector<1x8x8xf32>
    %35 = vector.shape_cast %34 : vector<1x8x8xf32> to vector<8x8xf32>
    %cst_41 = arith.constant dense<0.000000e+00> : vector<8x72xf32>
    %36 = tpu.matmul %35, %33, %cst_41 {dimension_numbers = #tpu.dot_dimension_numbers<[1], [0], [0], [1], [0, 0, 1, 1], [], []>} : vector<8x8xf32>, vector<8x72xf32>, vector<8x72xf32> -> vector<8x72xf32>
    %37 = arith.addf %31, %36 : vector<8x72xf32>
    %c0_42 = arith.constant 0 : index
    %c2_43 = arith.constant 2 : index
    %c0_44 = arith.constant 0 : index
    %c1_45 = arith.constant 1 : index
    %38 = vector.load %arg1[%c0_42, %c2_43, %c0_44, %c1_45] : memref<1x4x8x90xf32, #tpu.memory_space<vmem>>, vector<1x1x8x72xf32>
    %39 = vector.shape_cast %38 : vector<1x1x8x72xf32> to vector<8x72xf32>
    %c6 = arith.constant 6 : index
    %c0_46 = arith.constant 0 : index
    %c0_47 = arith.constant 0 : index
    %40 = vector.load %arg2[%c6, %c0_46, %c0_47] : memref<16x8x8xf32, #tpu.memory_space<vmem>>, vector<1x8x8xf32>
    %41 = vector.shape_cast %40 : vector<1x8x8xf32> to vector<8x8xf32>
    %cst_48 = arith.constant dense<0.000000e+00> : vector<8x72xf32>
    %42 = tpu.matmul %41, %39, %cst_48 {dimension_numbers = #tpu.dot_dimension_numbers<[1], [0], [0], [1], [0, 0, 1, 1], [], []>} : vector<8x8xf32>, vector<8x72xf32>, vector<8x72xf32> -> vector<8x72xf32>
    %43 = arith.addf %37, %42 : vector<8x72xf32>
    %c0_49 = arith.constant 0 : index
    %c3_50 = arith.constant 3 : index
    %c0_51 = arith.constant 0 : index
    %c1_52 = arith.constant 1 : index
    %44 = vector.load %arg1[%c0_49, %c3_50, %c0_51, %c1_52] : memref<1x4x8x90xf32, #tpu.memory_space<vmem>>, vector<1x1x8x72xf32>
    %45 = vector.shape_cast %44 : vector<1x1x8x72xf32> to vector<8x72xf32>
    %c7 = arith.constant 7 : index
    %c0_53 = arith.constant 0 : index
    %c0_54 = arith.constant 0 : index
    %46 = vector.load %arg2[%c7, %c0_53, %c0_54] : memref<16x8x8xf32, #tpu.memory_space<vmem>>, vector<1x8x8xf32>
    %47 = vector.shape_cast %46 : vector<1x8x8xf32> to vector<8x8xf32>
    %cst_55 = arith.constant dense<0.000000e+00> : vector<8x72xf32>
    %48 = tpu.matmul %47, %45, %cst_55 {dimension_numbers = #tpu.dot_dimension_numbers<[1], [0], [0], [1], [0, 0, 1, 1], [], []>} : vector<8x8xf32>, vector<8x72xf32>, vector<8x72xf32> -> vector<8x72xf32>
    %49 = arith.addf %43, %48 : vector<8x72xf32>
    %c0_56 = arith.constant 0 : index
    %c0_57 = arith.constant 0 : index
    %c0_58 = arith.constant 0 : index
    %c9 = arith.constant 9 : index
    %50 = vector.load %arg1[%c0_56, %c0_57, %c0_58, %c9] : memref<1x4x8x90xf32, #tpu.memory_space<vmem>>, vector<1x1x8x72xf32>
    %51 = vector.shape_cast %50 : vector<1x1x8x72xf32> to vector<8x72xf32>
    %c8 = arith.constant 8 : index
    %c0_59 = arith.constant 0 : index
    %c0_60 = arith.constant 0 : index
    %52 = vector.load %arg2[%c8, %c0_59, %c0_60] : memref<16x8x8xf32, #tpu.memory_space<vmem>>, vector<1x8x8xf32>
    %53 = vector.shape_cast %52 : vector<1x8x8xf32> to vector<8x8xf32>
    %cst_61 = arith.constant dense<0.000000e+00> : vector<8x72xf32>
    %54 = tpu.matmul %53, %51, %cst_61 {dimension_numbers = #tpu.dot_dimension_numbers<[1], [0], [0], [1], [0, 0, 1, 1], [], []>} : vector<8x8xf32>, vector<8x72xf32>, vector<8x72xf32> -> vector<8x72xf32>
    %55 = arith.addf %49, %54 : vector<8x72xf32>
    %c0_62 = arith.constant 0 : index
    %c1_63 = arith.constant 1 : index
    %c0_64 = arith.constant 0 : index
    %c9_65 = arith.constant 9 : index
    %56 = vector.load %arg1[%c0_62, %c1_63, %c0_64, %c9_65] : memref<1x4x8x90xf32, #tpu.memory_space<vmem>>, vector<1x1x8x72xf32>
    %57 = vector.shape_cast %56 : vector<1x1x8x72xf32> to vector<8x72xf32>
    %c9_66 = arith.constant 9 : index
    %c0_67 = arith.constant 0 : index
    %c0_68 = arith.constant 0 : index
    %58 = vector.load %arg2[%c9_66, %c0_67, %c0_68] : memref<16x8x8xf32, #tpu.memory_space<vmem>>, vector<1x8x8xf32>
    %59 = vector.shape_cast %58 : vector<1x8x8xf32> to vector<8x8xf32>
    %cst_69 = arith.constant dense<0.000000e+00> : vector<8x72xf32>
    %60 = tpu.matmul %59, %57, %cst_69 {dimension_numbers = #tpu.dot_dimension_numbers<[1], [0], [0], [1], [0, 0, 1, 1], [], []>} : vector<8x8xf32>, vector<8x72xf32>, vector<8x72xf32> -> vector<8x72xf32>
    %61 = arith.addf %55, %60 : vector<8x72xf32>
    %c0_70 = arith.constant 0 : index
    %c0_71 = arith.constant 0 : index
    %c0_72 = arith.constant 0 : index
    %c10 = arith.constant 10 : index
    %62 = vector.load %arg1[%c0_70, %c0_71, %c0_72, %c10] : memref<1x4x8x90xf32, #tpu.memory_space<vmem>>, vector<1x1x8x72xf32>
    %63 = vector.shape_cast %62 : vector<1x1x8x72xf32> to vector<8x72xf32>
    %c10_73 = arith.constant 10 : index
    %c0_74 = arith.constant 0 : index
    %c0_75 = arith.constant 0 : index
    %64 = vector.load %arg2[%c10_73, %c0_74, %c0_75] : memref<16x8x8xf32, #tpu.memory_space<vmem>>, vector<1x8x8xf32>
    %65 = vector.shape_cast %64 : vector<1x8x8xf32> to vector<8x8xf32>
    %cst_76 = arith.constant dense<0.000000e+00> : vector<8x72xf32>
    %66 = tpu.matmul %65, %63, %cst_76 {dimension_numbers = #tpu.dot_dimension_numbers<[1], [0], [0], [1], [0, 0, 1, 1], [], []>} : vector<8x8xf32>, vector<8x72xf32>, vector<8x72xf32> -> vector<8x72xf32>
    %67 = arith.addf %61, %66 : vector<8x72xf32>
    %c0_77 = arith.constant 0 : index
    %c1_78 = arith.constant 1 : index
    %c0_79 = arith.constant 0 : index
    %c10_80 = arith.constant 10 : index
    %68 = vector.load %arg1[%c0_77, %c1_78, %c0_79, %c10_80] : memref<1x4x8x90xf32, #tpu.memory_space<vmem>>, vector<1x1x8x72xf32>
    %69 = vector.shape_cast %68 : vector<1x1x8x72xf32> to vector<8x72xf32>
    %c11 = arith.constant 11 : index
    %c0_81 = arith.constant 0 : index
    %c0_82 = arith.constant 0 : index
    %70 = vector.load %arg2[%c11, %c0_81, %c0_82] : memref<16x8x8xf32, #tpu.memory_space<vmem>>, vector<1x8x8xf32>
    %71 = vector.shape_cast %70 : vector<1x8x8xf32> to vector<8x8xf32>
    %cst_83 = arith.constant dense<0.000000e+00> : vector<8x72xf32>
    %72 = tpu.matmul %71, %69, %cst_83 {dimension_numbers = #tpu.dot_dimension_numbers<[1], [0], [0], [1], [0, 0, 1, 1], [], []>} : vector<8x8xf32>, vector<8x72xf32>, vector<8x72xf32> -> vector<8x72xf32>
    %73 = arith.addf %67, %72 : vector<8x72xf32>
    %c0_84 = arith.constant 0 : index
    %c2_85 = arith.constant 2 : index
    %c0_86 = arith.constant 0 : index
    %c9_87 = arith.constant 9 : index
    %74 = vector.load %arg1[%c0_84, %c2_85, %c0_86, %c9_87] : memref<1x4x8x90xf32, #tpu.memory_space<vmem>>, vector<1x1x8x72xf32>
    %75 = vector.shape_cast %74 : vector<1x1x8x72xf32> to vector<8x72xf32>
    %c12 = arith.constant 12 : index
    %c0_88 = arith.constant 0 : index
    %c0_89 = arith.constant 0 : index
    %76 = vector.load %arg2[%c12, %c0_88, %c0_89] : memref<16x8x8xf32, #tpu.memory_space<vmem>>, vector<1x8x8xf32>
    %77 = vector.shape_cast %76 : vector<1x8x8xf32> to vector<8x8xf32>
    %cst_90 = arith.constant dense<0.000000e+00> : vector<8x72xf32>
    %78 = tpu.matmul %77, %75, %cst_90 {dimension_numbers = #tpu.dot_dimension_numbers<[1], [0], [0], [1], [0, 0, 1, 1], [], []>} : vector<8x8xf32>, vector<8x72xf32>, vector<8x72xf32> -> vector<8x72xf32>
    %79 = arith.addf %73, %78 : vector<8x72xf32>
    %c0_91 = arith.constant 0 : index
    %c3_92 = arith.constant 3 : index
    %c0_93 = arith.constant 0 : index
    %c9_94 = arith.constant 9 : index
    %80 = vector.load %arg1[%c0_91, %c3_92, %c0_93, %c9_94] : memref<1x4x8x90xf32, #tpu.memory_space<vmem>>, vector<1x1x8x72xf32>
    %81 = vector.shape_cast %80 : vector<1x1x8x72xf32> to vector<8x72xf32>
    %c13 = arith.constant 13 : index
    %c0_95 = arith.constant 0 : index
    %c0_96 = arith.constant 0 : index
    %82 = vector.load %arg2[%c13, %c0_95, %c0_96] : memref<16x8x8xf32, #tpu.memory_space<vmem>>, vector<1x8x8xf32>
    %83 = vector.shape_cast %82 : vector<1x8x8xf32> to vector<8x8xf32>
    %cst_97 = arith.constant dense<0.000000e+00> : vector<8x72xf32>
    %84 = tpu.matmul %83, %81, %cst_97 {dimension_numbers = #tpu.dot_dimension_numbers<[1], [0], [0], [1], [0, 0, 1, 1], [], []>} : vector<8x8xf32>, vector<8x72xf32>, vector<8x72xf32> -> vector<8x72xf32>
    %85 = arith.addf %79, %84 : vector<8x72xf32>
    %c0_98 = arith.constant 0 : index
    %c2_99 = arith.constant 2 : index
    %c0_100 = arith.constant 0 : index
    %c10_101 = arith.constant 10 : index
    %86 = vector.load %arg1[%c0_98, %c2_99, %c0_100, %c10_101] : memref<1x4x8x90xf32, #tpu.memory_space<vmem>>, vector<1x1x8x72xf32>
    %87 = vector.shape_cast %86 : vector<1x1x8x72xf32> to vector<8x72xf32>
    %c14 = arith.constant 14 : index
    %c0_102 = arith.constant 0 : index
    %c0_103 = arith.constant 0 : index
    %88 = vector.load %arg2[%c14, %c0_102, %c0_103] : memref<16x8x8xf32, #tpu.memory_space<vmem>>, vector<1x8x8xf32>
    %89 = vector.shape_cast %88 : vector<1x8x8xf32> to vector<8x8xf32>
    %cst_104 = arith.constant dense<0.000000e+00> : vector<8x72xf32>
    %90 = tpu.matmul %89, %87, %cst_104 {dimension_numbers = #tpu.dot_dimension_numbers<[1], [0], [0], [1], [0, 0, 1, 1], [], []>} : vector<8x8xf32>, vector<8x72xf32>, vector<8x72xf32> -> vector<8x72xf32>
    %91 = arith.addf %85, %90 : vector<8x72xf32>
    %c0_105 = arith.constant 0 : index
    %c3_106 = arith.constant 3 : index
    %c0_107 = arith.constant 0 : index
    %c10_108 = arith.constant 10 : index
    %92 = vector.load %arg1[%c0_105, %c3_106, %c0_107, %c10_108] : memref<1x4x8x90xf32, #tpu.memory_space<vmem>>, vector<1x1x8x72xf32>
    %93 = vector.shape_cast %92 : vector<1x1x8x72xf32> to vector<8x72xf32>
    %c15 = arith.constant 15 : index
    %c0_109 = arith.constant 0 : index
    %c0_110 = arith.constant 0 : index
    %94 = vector.load %arg2[%c15, %c0_109, %c0_110] : memref<16x8x8xf32, #tpu.memory_space<vmem>>, vector<1x8x8xf32>
    %95 = vector.shape_cast %94 : vector<1x8x8xf32> to vector<8x8xf32>
    %cst_111 = arith.constant dense<0.000000e+00> : vector<8x72xf32>
    %96 = tpu.matmul %95, %93, %cst_111 {dimension_numbers = #tpu.dot_dimension_numbers<[1], [0], [0], [1], [0, 0, 1, 1], [], []>} : vector<8x8xf32>, vector<8x72xf32>, vector<8x72xf32> -> vector<8x72xf32>
    %97 = arith.addf %91, %96 : vector<8x72xf32>
    %c0_112 = arith.constant 0 : index
    %c0_113 = arith.constant 0 : index
    %98 = vector.load %arg3[%c0_112, %c0_113] : memref<8x1xf32, #tpu.memory_space<vmem>>, vector<8x1xf32>
    %99 = vector.broadcast %98 : vector<8x1xf32> to vector<8x72xf32>
    %100 = arith.addf %97, %99 : vector<8x72xf32>
    %cst_114 = arith.constant 0.000000e+00 : f32
    %101 = vector.broadcast %cst_114 : f32 to vector<8x72xf32>
    %102 = arith.cmpf ogt, %100, %101 : vector<8x72xf32>
    %cst_115 = arith.constant 2.000000e-01 : f32
    %103 = vector.broadcast %cst_115 : f32 to vector<8x72xf32>
    %104 = arith.mulf %103, %100 : vector<8x72xf32>
    %105 = arith.select %102, %100, %104 : vector<8x72xi1>, vector<8x72xf32>
    %c0_116 = arith.constant 0 : index
    %c0_117 = arith.constant 0 : index
    %106 = vector.load %arg6[%c0_116, %c0_117] : memref<1x72xf32, #tpu.memory_space<vmem>>, vector<1x72xf32>
    %107 = vector.broadcast %106 : vector<1x72xf32> to vector<8x72xf32>
    %108 = arith.mulf %105, %107 : vector<8x72xf32>
    %109 = arith.index_cast %arg0 : i32 to index
    %c0_118 = arith.constant 0 : index
    %c0_119 = arith.constant 0 : index
    %110 = vector.load %arg7[%109, %c0_118, %c0_119] : memref<2x8x72xf32, #tpu.memory_space<vmem>>, vector<1x8x72xf32>
    %111 = vector.shape_cast %110 : vector<1x8x72xf32> to vector<8x72xf32>
    %112 = vector.shape_cast %108 : vector<8x72xf32> to vector<1x8x72xf32>
    tpu.vector_store %arg7[%109, %c0_118, %c0_119], %112 {strides = array<i32>} : memref<2x8x72xf32, #tpu.memory_space<vmem>>, vector<1x8x72xf32>,
    %c0_120 = arith.constant 0 : index
    %c0_121 = arith.constant 0 : index
    %113 = vector.load %arg8[%c0_120, %c0_121] : memref<8x1xf32, #tpu.memory_space<vmem>>, vector<8x1xf32>
    %cst_122 = arith.constant dense<0.000000e+00> : vector<8xf32>
    %114 = vector.multi_reduction <add>, %108, %cst_122 [1] : vector<8x72xf32> to vector<8xf32>
    %115 = vector.shape_cast %114 : vector<8xf32> to vector<8x1xf32>
    %116 = arith.addf %113, %115 : vector<8x1xf32>
    %c0_123 = arith.constant 0 : index
    %c0_124 = arith.constant 0 : index
    %117 = vector.load %arg8[%c0_123, %c0_124] : memref<8x1xf32, #tpu.memory_space<vmem>>, vector<8x1xf32>
    tpu.vector_store %arg8[%c0_123, %c0_124], %116 {strides = array<i32>} : memref<8x1xf32, #tpu.memory_space<vmem>>, vector<8x1xf32>,
    %c0_125 = arith.constant 0 : index
    %c0_126 = arith.constant 0 : index
    %118 = vector.load %arg9[%c0_125, %c0_126] : memref<8x1xf32, #tpu.memory_space<vmem>>, vector<8x1xf32>
    %119 = arith.mulf %108, %108 : vector<8x72xf32>
    %cst_127 = arith.constant dense<0.000000e+00> : vector<8xf32>
    %120 = vector.multi_reduction <add>, %119, %cst_127 [1] : vector<8x72xf32> to vector<8xf32>
    %121 = vector.shape_cast %120 : vector<8xf32> to vector<8x1xf32>
    %122 = arith.addf %118, %121 : vector<8x1xf32>
    %c0_128 = arith.constant 0 : index
    %c0_129 = arith.constant 0 : index
    %123 = vector.load %arg9[%c0_128, %c0_129] : memref<8x1xf32, #tpu.memory_space<vmem>>, vector<8x1xf32>
    tpu.vector_store %arg9[%c0_128, %c0_129], %122 {strides = array<i32>} : memref<8x1xf32, #tpu.memory_space<vmem>>, vector<8x1xf32>,
    %c1_i32 = arith.constant 1 : i32
    %124 = arith.cmpi eq, %arg0, %c1_i32 : i32
    %125 = arith.extui %124 : i1 to i32
    %c0_i32_130 = arith.constant 0 : i32
    %126 = arith.cmpi ne, %125, %c0_i32_130 : i32
    scf.if %126 {
      %c0_131 = arith.constant 0 : index
      %c0_132 = arith.constant 0 : index
      %127 = vector.load %arg8[%c0_131, %c0_132] : memref<8x1xf32, #tpu.memory_space<vmem>>, vector<8x1xf32>
      %cst_133 = arith.constant 7.812500e-03 : f32
      %128 = vector.broadcast %cst_133 : f32 to vector<8x1xf32>
      %129 = arith.mulf %127, %128 : vector<8x1xf32>
      %c0_134 = arith.constant 0 : index
      %c0_135 = arith.constant 0 : index
      %130 = vector.load %arg9[%c0_134, %c0_135] : memref<8x1xf32, #tpu.memory_space<vmem>>, vector<8x1xf32>
      %cst_136 = arith.constant 7.812500e-03 : f32
      %131 = vector.broadcast %cst_136 : f32 to vector<8x1xf32>
      %132 = arith.mulf %130, %131 : vector<8x1xf32>
      %133 = arith.mulf %129, %129 : vector<8x1xf32>
      %134 = arith.subf %132, %133 : vector<8x1xf32>
      %cst_137 = arith.constant 0.000000e+00 : f32
      %135 = vector.broadcast %cst_137 : f32 to vector<8x1xf32>
      %136 = arith.maximumf %134, %135 : vector<8x1xf32>
      %c0_138 = arith.constant 0 : index
      %c0_139 = arith.constant 0 : index
      %137 = vector.load %arg4[%c0_138, %c0_139] : memref<8x1xf32, #tpu.memory_space<vmem>>, vector<8x1xf32>
      %cst_140 = arith.constant 9.99999974E-6 : f32
      %138 = vector.broadcast %cst_140 : f32 to vector<8x1xf32>
      %139 = arith.addf %136, %138 : vector<8x1xf32>
      %140 = math.rsqrt %139 : vector<8x1xf32>
      %141 = arith.mulf %137, %140 : vector<8x1xf32>
      %c0_141 = arith.constant 0 : index
      %c0_142 = arith.constant 0 : index
      %142 = vector.load %arg5[%c0_141, %c0_142] : memref<8x1xf32, #tpu.memory_space<vmem>>, vector<8x1xf32>
      %143 = arith.mulf %129, %141 : vector<8x1xf32>
      %144 = arith.subf %142, %143 : vector<8x1xf32>
      %c0_i32_143 = arith.constant 0 : i32
      %c2_i32 = arith.constant 2 : i32
      %145 = arith.addi %c0_i32_143, %c2_i32 : i32
      %c1_i32_144 = arith.constant 1 : i32
      scf.for %arg10 = %c0_i32_143 to %145 step %c1_i32_144  : i32 {
        %146 = arith.index_cast %arg10 : i32 to index
        %c0_146 = arith.constant 0 : index
        %c0_147 = arith.constant 0 : index
        %147 = vector.load %arg7[%146, %c0_146, %c0_147] : memref<2x8x72xf32, #tpu.memory_space<vmem>>, vector<1x8x72xf32>
        %148 = vector.shape_cast %147 : vector<1x8x72xf32> to vector<8x72xf32>
        %149 = vector.broadcast %141 : vector<8x1xf32> to vector<8x72xf32>
        %150 = arith.mulf %148, %149 : vector<8x72xf32>
        %151 = vector.broadcast %144 : vector<8x1xf32> to vector<8x72xf32>
        %152 = arith.addf %150, %151 : vector<8x72xf32>
        %153 = arith.index_cast %arg10 : i32 to index
        %c0_148 = arith.constant 0 : index
        %c0_149 = arith.constant 0 : index
        %154 = vector.load %arg7[%153, %c0_148, %c0_149] : memref<2x8x72xf32, #tpu.memory_space<vmem>>, vector<1x8x72xf32>
        %155 = vector.shape_cast %154 : vector<1x8x72xf32> to vector<8x72xf32>
        %156 = vector.shape_cast %152 : vector<8x72xf32> to vector<1x8x72xf32>
        tpu.vector_store %arg7[%153, %c0_148, %c0_149], %156 {strides = array<i32>} : memref<2x8x72xf32, #tpu.memory_space<vmem>>, vector<1x8x72xf32>,
      }
      %c2_i32_145 = arith.constant 2 : i32
    } else {
    }
    return
  }
  func.func @transform_0(%arg0: i32) -> (i32, i32, i32, i32) {
    %c0_i32 = arith.constant 0 : i32
    %c0_i32_0 = arith.constant 0 : i32
    %c0_i32_1 = arith.constant 0 : i32
    %c0_i32_2 = arith.constant 0 : i32
    return %arg0, %c0_i32, %c0_i32_0, %c0_i32_1 : i32, i32, i32, i32
  }
  func.func @transform_1(%arg0: i32) -> (i32, i32, i32) {
    %c0_i32 = arith.constant 0 : i32
    %c0_i32_0 = arith.constant 0 : i32
    %c0_i32_1 = arith.constant 0 : i32
    %c0_i32_2 = arith.constant 0 : i32
    return %c0_i32, %c0_i32_0, %c0_i32_1 : i32, i32, i32
  }
  func.func @transform_2(%arg0: i32) -> (i32, i32) {
    %c0_i32 = arith.constant 0 : i32
    %c0_i32_0 = arith.constant 0 : i32
    %c0_i32_1 = arith.constant 0 : i32
    return %c0_i32, %c0_i32_0 : i32, i32
  }
  func.func @transform_3(%arg0: i32) -> (i32, i32) {
    %c0_i32 = arith.constant 0 : i32
    %c0_i32_0 = arith.constant 0 : i32
    %c0_i32_1 = arith.constant 0 : i32
    return %c0_i32, %c0_i32_0 : i32, i32
  }
  func.func @transform_4(%arg0: i32) -> (i32, i32) {
    %c0_i32 = arith.constant 0 : i32
    %c0_i32_0 = arith.constant 0 : i32
    %c0_i32_1 = arith.constant 0 : i32
    return %c0_i32, %c0_i32_0 : i32, i32
  }
  func.func @transform_5(%arg0: i32) -> (i32, i32) {
    %c0_i32 = arith.constant 0 : i32
    %c0_i32_0 = arith.constant 0 : i32
    %c0_i32_1 = arith.constant 0 : i32
    return %c0_i32, %c0_i32_0 : i32, i32
  }
  func.func @transform_6(%arg0: i32) -> (i32, i32, i32) {
    %c0_i32 = arith.constant 0 : i32
    %c0_i32_0 = arith.constant 0 : i32
    %c0_i32_1 = arith.constant 0 : i32
    %c0_i32_2 = arith.constant 0 : i32
    return %c0_i32, %c0_i32_0, %c0_i32_1 : i32, i32, i32
  }
}

</mosaic_0001>

<bundles_post_ra>
// kernel: down_conv_block.1
= control target key start
LH: loop header
LB: loop body
LE: loop exit
PB: predicated region body
PF: predicated region fallthrough
CT: control target
= control target key end

     0   :  { %s1865_s21 = smov 0   ;;  %s2020_s0 = inlined_call_operand.vmem [shape: f32[2,4,8,90], index: 0, kind: input, shape index: {}]   ;;  %s2021_s1 = inlined_call_operand.vmem [shape: f32[16,8,8], index: 1, kind: input, shape index: {}]   ;;  %s2022_s2 = inlined_call_operand.vmem [shape: f32[8,1], index: 2, kind: input, shape index: {}]   ;;  %s2023_s3 = inlined_call_operand.vmem [shape: f32[8,1], index: 3, kind: input, shape index: {}]   ;;  %s2024_s4 = inlined_call_operand.vmem [shape: f32[8,1], index: 4, kind: input, shape index: {}]   ;;  %s2025_s5 = inlined_call_operand.vmem [shape: f32[1,72], index: 5, kind: input, shape index: {}]   ;;  %s2026_s6 = inlined_call_operand.vmem [shape: f32[2,8,72], index: 6, kind: output, shape index: {}]  }
   0x1 LB: > { %s1871_s22 = sadd.s32 4294967295, %s1816_s21   ;;  %p1621_p0 = scmp.ge.s32.totalorder %s1816_s21, 1  ;;  %s1816_s21 = sphi %s1865_s21, %s16_s21  }
   0x2   : > { %p207_p1 = scmp.lt.s32.totalorder %s1816_s21, 3 }
   0x4   : > { %p208_p2 = pnand %p1621_p0, %p207_p1 }
   0x5   : > { %p232_p3 = scmp.lt.s32.totalorder (!%p208_p2), %s1871_s22, 1  ;;  %p1624_p4 = scmp.ne.s32.totalorder (!%p208_p2), %s1871_s22, 0 }
   0x6   : > { %211 = sbr.rel (%p208_p2) target bundleno = 677 (0x2a5), region = 44 }
   0xb   : > { %s233_s23 = scalar_select %p232_p3, %s1871_s22, 1 }
   0xc   : > { %240 = sbr.rel (%p1624_p4) target bundleno = 19 (0x13), region = 48 }
   0xd   : > { %s1665_s24 = sshll.u32 %s233_s23, 5 }
   0xe   : > { %s236_s27 = scalar_lea.vmem %s2020_s0, %s1665_s24 }
  0x11   : > { %vm241_vm0 = vcmask 7168   ;;  %v1822_v0 = vmov 0.0  }
  0x12   : > { %242 = vst.msk [vmem:[#allocation2] sm:$0xff] %vm241_vm0, %v1822_v0  ;;  %243 = vst.msk [vmem:[#allocation3] sm:$0xff] %vm241_vm0, %v1822_v0 }
  0x13 PF: > { %v244_v1 = vld [vmem:[%s236_s27] sm:$0xff]  ;;  %v1633_v2 = vld [vmem:[%s236_s27 + $0x10] sm:$0xff]  ;;  %s1823_s28 = smov 127   ;;  %v1626_v3 = vld [vmem:[%s2021_s1 + $0x8] sm:$0xff]  ;;  %vm250_vm1 = vcmask 64512   ;;  %v1824_v6 = vmov 0.0  }
  0x14   : > { %400 = vrot.lane.b32.xlu0 %v244_v1, %s1823_s28  ;;  %716 = vrot.lane.b32.xlu1 %v1633_v2, %s1823_s28  ;;  %v1625_v4 = vld [vmem:[%s236_s27 + $0x8] sm:$0xff]  ;;  %v1636_v5 = vld [vmem:[%s236_s27 + $0x18] sm:$0xff]  ;;  %vm1825_vm2 = vmmov 0   ;;  %s1826_s9 = smov 119   ;;  %s1827_s10 = smov 118   ;;  %v1828_v8 = vmov 0  }
  0x15   : > { %1698 = vmatprep.subr.mxu0 %v1824_v6  ;;  %1700 = vmatprep.mubr.msk.f32.mxu0 %vm1825_vm2, %v1824_v6  ;;  %v245_v7 = vld [vmem:[%s2021_s1] sm:$0xff]  ;;  %v1629_v10 = vld [vmem:[%s2021_s1 + $0x10] sm:$0xff]  ;;  %v1631_v13 = vld [vmem:[%s2021_s1 + $0x18] sm:$0xff]  ;;  %s1660_s19 = sshll.u32 %s1871_s22, 3  ;;  %vm1525_vm4 = vcmask 588800   ;;  %vm1532_vm5 = vcmask 7168  }
  0x16   : > { %1699 = vmatpush3.msra.mxu0 %v1625_v4  ;;  %1703 = vmatprep.subr.mxu1 %v1824_v6  ;;  %v1505_v9 = vld [vmem:[%s2022_s2] sm:$0xff]  ;;  %v1637_v17 = vld [vmem:[%s2021_s1 + $0x28] sm:$0xff]  ;;  %v1639_v18 = vld [vmem:[%s2021_s1 + $0x30] sm:$0xff]  ;;  %s1524_s26 = scalar_lea.vmem %s2026_s6, %s1660_s19  ;;  %p1661_p5 = scmp.ne.s32.totalorder %s1871_s22, 1 }
  0x17   : > { %1701 = vmatmul.mubr.msk.f32.vlgmr.msra.gmra.mxu0 %vm250_vm1, %v1626_v3  ;;  %1708 = vmatprep.subr.mxu0 %v1824_v6  ;;  %v1634_v14 = vld [vmem:[%s2021_s1 + $0x20] sm:$0xff]  ;;  %v1641_v21 = vld [vmem:[%s2021_s1 + $0x38] sm:$0xff]  ;;  %v1645_v25 = vld [vmem:[%s2021_s1 + $0x48] sm:$0xff]  ;;  %s1818_s22 = smov (!%p1661_p5), 0  }
  0x18   : > { %480 = vrot.lane.b32.xlu0 %v1625_v4, %s1823_s28  ;;  %796 = vrot.lane.b32.xlu1 %v1636_v5, %s1823_s28  ;;  %v1643_v22 = vld [vmem:[%s2021_s1 + $0x40] sm:$0xff]  ;;  %v1647_v26 = vld [vmem:[%s2021_s1 + $0x50] sm:$0xff] }
  0x19   : > { %1704 = vmatpush3.msra.mxu1 %v244_v1  ;;  %1705 = vmatprep.mubr.msk.f32.mxu1 %vm1825_vm2, %v1824_v6  ;;  %v1649_v29 = vld [vmem:[%s2021_s1 + $0x58] sm:$0xff]  ;;  %v1651_v30 = vld [vmem:[%s2021_s1 + $0x60] sm:$0xff]  ;;  %v1653_v32 = vld [vmem:[%s2021_s1 + $0x68] sm:$0xff] }
  0x1a   : > { %1706 = vmatmul.mubr.msk.f32.vlgmr.msra.gmra.mxu1 %vm250_vm1, %v245_v7  ;;  %1710 = vmatprep.mubr.msk.f32.mxu0 %vm1825_vm2, %v1824_v6  ;;  %v1655_v33 = vld [vmem:[%s2021_s1 + $0x70] sm:$0xff]  ;;  %v1657_v35 = vld [vmem:[%s2021_s1 + $0x78] sm:$0xff] }
  0x1b   : > { %1713 = vmatprep.subr.mxu1 %v1824_v6  ;;  %1715 = vmatprep.mubr.msk.f32.mxu1 %vm1825_vm2, %v1824_v6 }
  0x1c   : > { %875 = vrot.lane.b32.xlu0 %v244_v1, %s1826_s9  ;;  %954 = vrot.lane.b32.xlu1 %v1625_v4, %s1826_s9 }
  0x1d   : > { %1802 = vset.pattern.permute.xlu0 %v1828_v8 }
  0x20   : > { %1033 = vrot.lane.b32.xlu0 %v244_v1, %s1827_s10  ;;  %1112 = vrot.lane.b32.xlu1 %v1625_v4, %s1827_s10 }
  0x24   : > { %1191 = vrot.lane.b32.xlu0 %v1633_v2, %s1826_s9  ;;  %1270 = vrot.lane.b32.xlu1 %v1636_v5, %s1826_s9 }
  0x28   : > { %1349 = vrot.lane.b32.xlu0 %v1633_v2, %s1827_s10  ;;  %1428 = vrot.lane.b32.xlu1 %v1636_v5, %s1827_s10 }
  0x2c   : > { %1508 = vperm.xlu0 %1802, %v1505_v9  }
  0x86   : > { %v401_v11 = vpop.permute.xlu0 %400  ;;  %v717_v12 = vpop.permute.xlu1 %716 }
  0x87   : > { %1709 = vmatpush3.msra.mxu0 %v401_v11 }
  0x88   : > { %1711 = vmatmul.mubr.msk.f32.vlgmr.msra.gmra.mxu0 %vm250_vm1, %v1629_v10  ;;  %1718 = vmatprep.subr.mxu0 %v1824_v6 }
  0x89   : > { %1719 = vmatpush3.msra.mxu0 %v1633_v2  ;;  %1720 = vmatprep.mubr.msk.f32.mxu0 %vm1825_vm2, %v1824_v6 }
  0x8a   : > { %v481_v15 = vpop.permute.xlu0 %480  ;;  %1728 = vmatprep.subr.mxu0 %v1824_v6  ;;  %v797_v16 = vpop.permute.xlu1 %796 }
  0x8b   : > { %1714 = vmatpush3.msra.mxu1 %v481_v15 }
  0x8c   : > { %1716 = vmatmul.mubr.msk.f32.vlgmr.msra.gmra.mxu1 %vm250_vm1, %v1631_v13  ;;  %1721 = vmatmul.mubr.msk.f32.vlgmr.msra.gmra.mxu0 %vm250_vm1, %v1634_v14 }
  0x8d   : > { %1723 = vmatprep.subr.mxu1 %v1824_v6  ;;  %1725 = vmatprep.mubr.msk.f32.mxu1 %vm1825_vm2, %v1824_v6 }
  0x8e   : > { %1724 = vmatpush3.msra.mxu1 %v1636_v5  ;;  %1729 = vmatpush3.msra.mxu0 %v717_v12  ;;  %v876_v19 = vpop.permute.xlu0 %875  ;;  %v955_v20 = vpop.permute.xlu1 %954 }
  0x8f   : > { %1730 = vmatprep.mubr.msk.f32.mxu0 %vm1825_vm2, %v1824_v6  ;;  %1733 = vmatprep.subr.mxu1 %v1824_v6 }
  0x90   : > { %1726 = vmatmul.mubr.msk.f32.vlgmr.msra.gmra.mxu1 %vm250_vm1, %v1637_v17  ;;  %1731 = vmatmul.mubr.msk.f32.vlgmr.msra.gmra.mxu0 %vm250_vm1, %v1639_v18 }
  0x91   : > { %1734 = vmatpush3.msra.mxu1 %v797_v16  ;;  %1735 = vmatprep.mubr.msk.f32.mxu1 %vm1825_vm2, %v1824_v6 }
  0x92   : > { %1738 = vmatprep.subr.mxu0 %v1824_v6  ;;  %1740 = vmatprep.mubr.msk.f32.mxu0 %vm1825_vm2, %v1824_v6  ;;  %v1034_v23 = vpop.permute.xlu0 %1033  ;;  %v1113_v24 = vpop.permute.xlu1 %1112 }
  0x93   : > { %1739 = vmatpush3.msra.mxu0 %v876_v19  ;;  %1743 = vmatprep.subr.mxu1 %v1824_v6 }
  0x94   : > { %1736 = vmatmul.mubr.msk.f32.vlgmr.msra.gmra.mxu1 %vm250_vm1, %v1641_v21  ;;  %1741 = vmatmul.mubr.msk.f32.vlgmr.msra.gmra.mxu0 %vm250_vm1, %v1643_v22  ;;  %v1659_v22 = vld [vmem:[%s2025_s5] ss:$0 sm:$0xff] }
  0x95   : > { %1744 = vmatpush3.msra.mxu1 %v955_v20  ;;  %1745 = vmatprep.mubr.msk.f32.mxu1 %vm1825_vm2, %v1824_v6 }
  0x96   : > { %1748 = vmatprep.subr.mxu0 %v1824_v6  ;;  %1750 = vmatprep.mubr.msk.f32.mxu0 %vm1825_vm2, %v1824_v6  ;;  %v1192_v27 = vpop.permute.xlu0 %1191  ;;  %v1271_v28 = vpop.permute.xlu1 %1270 }
  0x97   : > { %1749 = vmatpush3.msra.mxu0 %v1034_v23  ;;  %1753 = vmatprep.subr.mxu1 %v1824_v6 }
  0x98   : > { %1746 = vmatmul.mubr.msk.f32.vlgmr.msra.gmra.mxu1 %vm250_vm1, %v1645_v25  ;;  %1751 = vmatmul.mubr.msk.f32.vlgmr.msra.gmra.mxu0 %vm250_vm1, %v1647_v26 }
  0x99   : > { %1754 = vmatpush3.msra.mxu1 %v1113_v24  ;;  %1755 = vmatprep.mubr.msk.f32.mxu1 %vm1825_vm2, %v1824_v6 }
  0x9a   : > { %1758 = vmatprep.subr.mxu0 %v1824_v6  ;;  %1760 = vmatprep.mubr.msk.f32.mxu0 %vm1825_vm2, %v1824_v6  ;;  %v1350_v31 = vpop.permute.xlu0 %1349  ;;  %v1429_v34 = vpop.permute.xlu1 %1428 }
  0x9b   : > { %1759 = vmatpush3.msra.mxu0 %v1192_v27  ;;  %1763 = vmatprep.subr.mxu1 %v1824_v6 }
  0x9c   : > { %1756 = vmatmul.mubr.msk.f32.vlgmr.msra.gmra.mxu1 %vm250_vm1, %v1649_v29  ;;  %1761 = vmatmul.mubr.msk.f32.vlgmr.msra.gmra.mxu0 %vm250_vm1, %v1651_v30  ;;  %v1534_v30 = vld [vmem:[#allocation3] sm:$0xff] }
  0x9d   : > { %1764 = vmatpush3.msra.mxu1 %v1271_v28  ;;  %1765 = vmatprep.mubr.msk.f32.mxu1 %vm1825_vm2, %v1824_v6  ;;  %v1527_v28 = vld [vmem:[#allocation2] sm:$0xff] }
  0x9e   : > { %1768 = vmatprep.subr.mxu0 %v1824_v6  ;;  %1770 = vmatprep.mubr.msk.f32.mxu0 %vm1825_vm2, %v1824_v6 }
  0x9f   : > { %1769 = vmatpush3.msra.mxu0 %v1350_v31  ;;  %1773 = vmatprep.subr.mxu1 %v1824_v6 }
  0xa0   : > { %1766 = vmatmul.mubr.msk.f32.vlgmr.msra.gmra.mxu1 %vm250_vm1, %v1653_v32  ;;  %1771 = vmatmul.mubr.msk.f32.vlgmr.msra.gmra.mxu0 %vm250_vm1, %v1655_v33 }
  0xa1   : > { %1774 = vmatpush3.msra.mxu1 %v1429_v34  ;;  %1775 = vmatprep.mubr.msk.f32.mxu1 %vm1825_vm2, %v1824_v6 }
  0xa4   : > { %1776 = vmatmul.mubr.msk.f32.vlgmr.msra.gmra.mxu1 %vm250_vm1, %v1657_v35 }
  0xa7   : > { %v1509_v17 = vpop.permute.xlu0 %1508 }
  0xd7   : > { %v320_v36 = vpop.f32.mrf.mxu0 }
  0xd9   : > { %v1702_v37 = vpop.f32.mrf.mxu0 }
  0xda   : > { %v393_v38 = vpop.f32.mrf.mxu1 }
  0xdb   : > { %v394_v39 = vadd.f32 %v393_v38, %v320_v36 }
  0xdc   : > { %v1707_v40 = vpop.f32.mrf.mxu1 }
 0x148   : > { %v472_v41 = vpop.f32.mrf.mxu0 }
 0x149   : > { %v476_v43 = vadd.f32 %v472_v41, %v394_v39 }
 0x14a   : > { %v1712_v42 = vpop.f32.mrf.mxu0 }
 0x14c   : > { %v552_v44 = vpop.f32.mrf.mxu1  ;;  %v630_v45 = vpop.f32.mrf.mxu0 }
 0x14d   : > { %v556_v46 = vadd.f32 %v552_v44, %v476_v43 }
 0x14e   : > { %v1717_v47 = vpop.f32.mrf.mxu1  ;;  %v1722_v48 = vpop.f32.mrf.mxu0 }
 0x14f   : > { %v634_v49 = vadd.f32 %v630_v45, %v556_v46 }
 0x150   : > { %v708_v50 = vpop.f32.mrf.mxu1  ;;  %v788_v51 = vpop.f32.mrf.mxu0 }
 0x151   : > { %v712_v52 = vadd.f32 %v708_v50, %v634_v49 }
 0x152   : > { %v1727_v53 = vpop.f32.mrf.mxu1  ;;  %v1732_v54 = vpop.f32.mrf.mxu0 }
 0x153   : > { %v792_v55 = vadd.f32 %v788_v51, %v712_v52 }
 0x154   : > { %v868_v56 = vpop.f32.mrf.mxu1  ;;  %v947_v57 = vpop.f32.mrf.mxu0 }
 0x155   : > { %v872_v58 = vadd.f32 %v868_v56, %v792_v55 }
 0x156   : > { %v1737_v59 = vpop.f32.mrf.mxu1  ;;  %v1742_v60 = vpop.f32.mrf.mxu0 }
 0x157   : > { %v951_v61 = vadd.f32 %v947_v57, %v872_v58 }
 0x158   : > { %v1026_v62 = vpop.f32.mrf.mxu1  ;;  %v1105_v63 = vpop.f32.mrf.mxu0 }
 0x159   : > { %v1030_v0 = vadd.f32 %v1026_v62, %v951_v61 }
 0x15a   : > { %v1747_v1 = vpop.f32.mrf.mxu1  ;;  %v1752_v2 = vpop.f32.mrf.mxu0 }
 0x15b   : > { %v1109_v3 = vadd.f32 %v1105_v63, %v1030_v0 }
 0x15c   : > { %v1184_v4 = vpop.f32.mrf.mxu1  ;;  %v1263_v5 = vpop.f32.mrf.mxu0 }
 0x15d   : > { %v1188_v6 = vadd.f32 %v1184_v4, %v1109_v3 }
 0x15e   : > { %v1757_v7 = vpop.f32.mrf.mxu1  ;;  %v1762_v8 = vpop.f32.mrf.mxu0 }
 0x15f   : > { %v1267_v9 = vadd.f32 %v1263_v5, %v1188_v6 }
 0x160   : > { %v1342_v10 = vpop.f32.mrf.mxu1  ;;  %v1421_v11 = vpop.f32.mrf.mxu0 }
 0x161   : > { %v1346_v12 = vadd.f32 %v1342_v10, %v1267_v9 }
 0x162   : > { %v1767_v13 = vpop.f32.mrf.mxu1  ;;  %v1772_v14 = vpop.f32.mrf.mxu0 }
 0x163   : > { %v1425_v15 = vadd.f32 %v1421_v11, %v1346_v12 }
 0x164   : > { %v1500_v16 = vpop.f32.mrf.mxu1 }
 0x165   : > { %v1504_v18 = vadd.f32 %v1500_v16, %v1425_v15 }
 0x166   : > { %v1777_v19 = vpop.f32.mrf.mxu1 }
 0x167   : > { %v1511_v20 = vadd.f32 %v1509_v17, %v1504_v18 }
 0x169   : > { %vm1512_vm3 = vcmp.gt.f32.partialorder %v1511_v20, 0.0  ;;  %v1513_v21 = vmul.f32 0.2, %v1511_v20 }
 0x16b   : > { %v1514_v23 = vsel %vm1512_vm3, %v1511_v20, %v1513_v21 }
 0x16c   : > { %v1522_v24 = vmul.f32 %v1659_v22, %v1514_v23 }
 0x16e   : > { %v1528_v25 = vsel %vm1525_vm4, %v1522_v24, 0.0  ;;  %1526 = vst.msk [vmem:[%s1524_s26] sm:$0xff] %vm1525_vm4, %v1522_v24  ;;  %v1535_v26 = vmul.f32 %v1522_v24, %v1522_v24 }
 0x16f   : > { %1529 = vadd.xlane.f32.xlu1 %v1528_v25 }
 0x170   : > { %v1536_v27 = vsel %vm1525_vm4, %v1535_v26, 0.0 }
 0x171   : > { %1537 = vadd.xlane.f32.xlu0 %v1536_v27 }
 0x1f8   : > { %v1530_v29 = vpop.xlane.xlu1 %1529 }
 0x1f9   : > { %v1531_v31 = vadd.f32 %v1530_v29, %v1527_v28  ;;  %1544 = sbr.rel (%p1661_p5) target bundleno = 677 (0x2a5), region = 52 }
 0x1fa   : > { %v1538_v32 = vpop.xlane.xlu0 %1537 }
 0x1fb   : > { %1533 = vst.msk [vmem:[#allocation2] sm:$0xff] %vm1532_vm5, %v1531_v31  ;;  %v1539_v33 = vadd.f32 %v1538_v32, %v1534_v30 }
 0x1fd   : > { %1540 = vst.msk [vmem:[#allocation3] sm:$0xff] %vm1532_vm5, %v1539_v33 }
 0x1fe   : > { %v1552_v42 = vld [vmem:[%s2023_s3] sm:$0xff] }
 0x1ff   : > { %v1556_v45 = vld [vmem:[%s2024_s4] sm:$0xff] }
 0x202   : > { %v1545_v34 = vld [vmem:[#allocation2] sm:$0xff] }
 0x203   : > { %v1546_v36 = vmul.f32 0.0078125, %v1545_v34 }
 0x204   : > { %v1547_v35 = vld [vmem:[#allocation3] sm:$0xff] }
 0x205   : > { %v1548_v37 = vmul.f32 0.0078125, %v1547_v35  ;;  %v1549_v38 = vmul.f32 %v1546_v36, %v1546_v36 }
 0x207   : > { %v1550_v39 = vsub.f32 %v1548_v37, %v1549_v38 }
 0x209   : > { %v1551_v40 = vmax.f32 %v1550_v39, 0.0 }
 0x20b   : > { %v1553_v41 = vadd.f32 1e-05, %v1551_v40 }
 0x20d   : > { %1803 = vrsqrt.f32 %v1553_v41 }
 0x21a   : > { %v1804_v43 = vpop.eup %1803 }
 0x21b   : > { %v1555_v44 = vmul.f32 %v1804_v43, %v1552_v42 }
 0x21d   : > { %v1557_v46 = vmul.f32 %v1555_v44, %v1546_v36 }
 0x21f   : > { %v1558_v47 = vsub.f32 %v1556_v45, %v1557_v46 }
 0x220 LB: >> { %v1829_v48 = vmov 0   ;;  %s1662_s7 = sshll.u32 %s1820_s22, 3  ;;  %s1564_s22 = sadd.s32 1, %s1820_s22   ;;  %s1820_s22 = sphi %s1818_s22, %s1564_s22  }
 0x221   : >> { %1805 = vset.pattern.permute.xlu0 %v1829_v48  ;;  %s1566_s10 = scalar_lea.vmem %s2026_s6, %s1662_s7  ;;  %p1561_p6 = scmp.ge.s32.totalorder %s1564_s22, 2  }
 0x222   : >> { %1570 = vperm.xlu0 %1805, %v1555_v44   ;;  %v1567_v50 = vld [vmem:[%s1566_s10] sm:$0xff] }
 0x226   : >> { %1576 = vperm.xlu0 %1805, %v1558_v47  }
 0x29d   : >> { %v1571_v49 = vpop.permute.xlu0 %1570 }
 0x29e   : >> { %v1573_v51 = vmul.f32 %v1571_v49, %v1567_v50 }
 0x2a0   : > { %1563 = sbr.rel (!%p1561_p6) target bundleno = 544 (0x220), region = 105 }
 0x2a1   : >> { %v1577_v52 = vpop.permute.xlu0 %1576 }
 0x2a2   : >> { %v1579_v53 = vadd.f32 %v1577_v52, %v1573_v51 }
 0x2a4   : >> { %1580 = vst.msk [vmem:[%s1566_s10] sm:$0xff] %vm1525_vm4, %v1579_v53 }
 0x2a5 PF: > { %s16_s21 = sadd.s32 1, %s1816_s21  }
 0x2a6   : > { %p13_p7 = scmp.ge.s32.totalorder %s16_s21, 4  }
 0x2a8   :  { %15 = sbr.rel (!%p13_p7) target bundleno = 1 (0x1), region = 116 }

</bundles_post_ra>
